<compile_context>
chip_gen: v7x
topology: tpu7x:2x2x1
jax: 0.10.0
libtpu: 0.0.40
codegen_flags: <defaults>
</compile_context>

<pallas_src>
import math
import functools

import jax
import jax.numpy as jnp
from jax.experimental import pallas as pl
from jax.experimental.pallas import tpu as pltpu

_SOFTPLUS_UNITY_ = 1.4427


# ------------------------------------------------------------------ helpers
def _round_up(x, m):
    return ((x + m - 1) // m) * m


def _cdiv(a, b):
    return -(-a // b)


def _vmem_budget():
    """Generation-aware VMEM numbers: (scoped vmem limit to request, per-tile budget)."""
    try:
        cap = int(pltpu.get_tpu_info().vmem_capacity_bytes)
    except Exception:
        cap = 64 << 20                       # conservative default (v7x: 64 MiB / TC)
    vmem_limit = min(cap // 2, 48 << 20)     # 32 MiB on v7x, 48 MiB on v5e/v6e
    tile_budget = vmem_limit // 2            # headroom for output tile, compiler scratch
    return vmem_limit, tile_budget


def _pick_tile(B, C, *, in_itemsize, n_f32_temps, extra_f32_rows=0,
               tb_cap=512, min_steps=4):
    """Rows per grid step.

    Budgets both the double-buffered streamed inputs and the live f32 [tb, C]
    intermediates, and keeps at least `min_steps` grid steps so (a) software
    pipelining overlaps DMA with the exp-heavy compute and (b) v7x megacore has
    more than one step to shard.
    """
    vmem_limit, budget = _vmem_budget()
    per_row = (2 * C * max(int(in_itemsize), 1)            # double-buffered logit DMA
               + (n_f32_temps + extra_f32_rows) * C * 4    # live f32 working set + scratch
               + 2 * 4)                                    # [tb,1] column inputs
    max_rows = max(8, budget // max(per_row, 1))
    tb_for_steps = _round_up(max(1, _cdiv(B, min_steps)), 8)
    tb = max(8, min(tb_cap, (max_rows // 8) * 8, tb_for_steps))
    return tb, vmem_limit


def _log_softmax_and_softmax(x, need_p):
    """Row-wise log-softmax (and optionally softmax) sharing one exp pass.

    The softmax uses a [tb,1] reciprocal + broadcast multiply instead of a
    [tb,C] divide (keeps the single EUP unloaded).
    """
    m = jnp.max(x, axis=1, keepdims=True)
    z = x - m
    e = jnp.exp(z)
    s = jnp.sum(e, axis=1, keepdims=True)
    lp = z - jnp.log(s)
    p = (e * pl.reciprocal(s, approx=False)) if need_p else None
    return lp, p


def _valid_rows(i, tb, b_true):
    row = jax.lax.broadcasted_iota(jnp.int32, (tb, 1), 0) + i * tb
    return row < b_true


def _gather_hyper_s_start(idx_ref, hs_hbm, hs_buf, sem, base, rows_here):
    """Issue one row DMA per valid sample: hyperS[idx[base+r]] -> hs_buf[r]."""
    @pl.loop(0, rows_here)
    def _(r):
        rid = idx_ref[base + r]
        pltpu.make_async_copy(hs_hbm.at[rid], hs_buf.at[r], sem).start()


def _gather_hyper_s_wait(hs_hbm, hs_buf, sem, rows_here):
    """Consume one completion per issued row DMA (same-shape dummy descriptor)."""
    @pl.loop(0, rows_here)
    def _(r):
        pltpu.make_async_copy(hs_hbm.at[0], hs_buf.at[0], sem).wait()


# ----- apply=True, soft=True (model 'SOFT' / 'BOTH'): KLDivLoss path -----
def _soft_loss_kernel(sym, tb, b_true,
                      idx_ref, logit_ref, hw_ref, hs_hbm, out_ref, hs_buf, sem):
    i = pl.program_id(0)
    base = i * tb
    rows_here = jnp.minimum(b_true - base, tb)

    # Start the in-kernel hyperS row gather (HBM -> VMEM scratch).
    _gather_hyper_s_start(idx_ref, hs_hbm, hs_buf, sem, base, rows_here)

    # Overlap: logit-side work while the gather DMAs are in flight.
    logit = logit_ref[...].astype(jnp.float32)   # [TB, C]
    hw = hw_ref[...].astype(jnp.float32)         # [TB, 1]
    # hyperW = 1.4427 * softplus(hyperW[idx])
    w = _SOFTPLUS_UNITY_ * jnp.logaddexp(hw, 0.0)
    lp_l, p_l = _log_softmax_and_softmax(logit, need_p=sym)

    _gather_hyper_s_wait(hs_hbm, hs_buf, sem, rows_here)
    hs = hs_buf[...].astype(jnp.float32)         # [TB, C] (tail rows garbage -> masked)
    lp_s, p_s = _log_softmax_and_softmax(hs, need_p=True)

    d = lp_s - lp_l
    if sym:
        # 0.5 * [ KL(softmax(hs) || softmax(logit)) + KL(softmax(logit) || softmax(hs)) ]
        cls = 0.5 * jnp.sum((p_s - p_l) * d, axis=1, keepdims=True)
    else:
        cls = jnp.sum(p_s * d, axis=1, keepdims=True)

    valid = _valid_rows(i, tb, b_true)
    partial = jnp.sum(jnp.where(valid, w * cls, 0.0))
    out_ref[...] = jnp.broadcast_to(partial, out_ref.shape).astype(jnp.float32)


# ----- apply=True, soft=False (model 'NONE' / 'WGHT'): CE with argmax(hyperS) -----
def _hard_loss_kernel(tb, b_true,
                      idx_ref, logit_ref, hw_ref, hs_hbm, out_ref, hs_buf, sem):
    i = pl.program_id(0)
    base = i * tb
    rows_here = jnp.minimum(b_true - base, tb)

    _gather_hyper_s_start(idx_ref, hs_hbm, hs_buf, sem, base, rows_here)

    logit = logit_ref[...].astype(jnp.float32)   # [TB, C]
    hw = hw_ref[...].astype(jnp.float32)         # [TB, 1]
    rows, c = logit.shape
    w = _SOFTPLUS_UNITY_ * jnp.logaddexp(hw, 0.0)
    lp, _ = _log_softmax_and_softmax(logit, need_p=False)

    _gather_hyper_s_wait(hs_hbm, hs_buf, sem, rows_here)
    hs = hs_buf[...].astype(jnp.float32)

    # hyperH = argmax(hyperS, dim=1); keep first-index tie-break (torch semantics).
    col = jax.lax.broadcasted_iota(jnp.int32, (rows, c), 1)
    mx = jnp.max(hs, axis=1, keepdims=True)
    cand = jnp.where(hs == mx, col, c)
    argidx = jnp.min(cand, axis=1, keepdims=True)
    onehot = col == argidx

    ce = -jnp.sum(jnp.where(onehot, lp, 0.0), axis=1, keepdims=True)
    valid = _valid_rows(i, tb, b_true)
    partial = jnp.sum(jnp.where(valid, w * ce, 0.0))
    out_ref[...] = jnp.broadcast_to(partial, out_ref.shape).astype(jnp.float32)


# ----- apply=False: plain CrossEntropyLoss(logit, target).mean() -----
def _plain_ce_kernel(tb, b_true, logit_ref, tgt_ref, out_ref):
    i = pl.program_id(0)

    logit = logit_ref[...].astype(jnp.float32)   # [TB, C]
    tgt = tgt_ref[...]                           # [TB, 1] int32
    rows, c = logit.shape

    lp, _ = _log_softmax_and_softmax(logit, need_p=False)
    col = jax.lax.broadcasted_iota(jnp.int32, (rows, c), 1)
    onehot = col == tgt
    ce = -jnp.sum(jnp.where(onehot, lp, 0.0), axis=1, keepdims=True)

    valid = _valid_rows(i, tb, b_true)
    partial = jnp.sum(jnp.where(valid, ce, 0.0))
    out_ref[...] = jnp.broadcast_to(partial, out_ref.shape).astype(jnp.float32)


# ------------------------------------------------------------------ wrapper
def loss_model_forward(idx, logit0, target, hyperW, hyperS, *, apply, soft, sym):
    """Pallas implementation of LossModel.forward (returns scalar loss)."""
    B, C = logit0.shape

    if apply:
        idx_i32 = idx.astype(jnp.int32)
        # hyperW gather stays in the wrapper: it is only B floats of traffic.
        hw = jnp.take(hyperW, idx_i32).astype(jnp.float32)[:, None]   # [B, 1]

        in_itemsize = jnp.dtype(logit0.dtype).itemsize
        n_f32 = 12 if soft else 8
        tb, vmem_limit = _pick_tile(B, C, in_itemsize=in_itemsize,
                                    n_f32_temps=n_f32, extra_f32_rows=1)
        nblk = _cdiv(B, tb)

        if soft:
            kernel = functools.partial(_soft_loss_kernel, bool(sym), tb, B)
            flops, transc = 14 * B * C, 3 * B * C
        else:
            kernel = functools.partial(_hard_loss_kernel, tb, B)
            flops, transc = 8 * B * C, 2 * B * C

        bytes_accessed = (B * C * in_itemsize                               # logit
                          + B * C * jnp.dtype(hyperS.dtype).itemsize        # gathered rows
                          + B * 4 + B * 4                                   # hw + idx
                          + nblk * 8 * 128 * 4)

        out = pl.pallas_call(
            kernel,
            out_shape=jax.ShapeDtypeStruct((nblk, 8, 128), jnp.float32),
            grid_spec=pltpu.PrefetchScalarGridSpec(
                num_scalar_prefetch=1,                 # idx -> SMEM
                grid=(nblk,),
                in_specs=[
                    pl.BlockSpec((tb, C), lambda i, idx_ref: (i, 0)),   # logit
                    pl.BlockSpec((tb, 1), lambda i, idx_ref: (i, 0)),   # hyperW[idx]
                    pl.BlockSpec(memory_space=pl.ANY),                  # hyperS stays in HBM
                ],
                out_specs=pl.BlockSpec((1, 8, 128), lambda i, idx_ref: (i, 0, 0)),
                scratch_shapes=[
                    pltpu.VMEM((tb, C), hyperS.dtype),                  # gathered hyperS rows
                    pltpu.SemaphoreType.DMA(()),
                ]),
            compiler_params=pltpu.CompilerParams(
                dimension_semantics=("parallel",),
                vmem_limit_bytes=vmem_limit),
            cost_estimate=pl.CostEstimate(
                flops=int(flops), transcendentals=int(transc),
                bytes_accessed=int(bytes_accessed)),
        )(idx_i32, logit0, hw, hyperS)
    else:
        tgt = target.astype(jnp.int32)[:, None]                        # [B, 1]
        in_itemsize = jnp.dtype(logit0.dtype).itemsize
        tb, vmem_limit = _pick_tile(B, C, in_itemsize=in_itemsize, n_f32_temps=6)
        nblk = _cdiv(B, tb)
        kernel = functools.partial(_plain_ce_kernel, tb, B)
        bytes_accessed = B * C * in_itemsize + B * 4 + nblk * 8 * 128 * 4

        out = pl.pallas_call(
            kernel,
            out_shape=jax.ShapeDtypeStruct((nblk, 8, 128), jnp.float32),
            grid_spec=pltpu.PrefetchScalarGridSpec(
                num_scalar_prefetch=0,
                grid=(nblk,),
                in_specs=[pl.BlockSpec((tb, C), lambda i: (i, 0)),
                          pl.BlockSpec((tb, 1), lambda i: (i, 0))],
                out_specs=pl.BlockSpec((1, 8, 128), lambda i: (i, 0, 0))),
            compiler_params=pltpu.CompilerParams(
                dimension_semantics=("parallel",),
                vmem_limit_bytes=vmem_limit),
            cost_estimate=pl.CostEstimate(
                flops=int(6 * B * C), transcendentals=int(2 * B * C),
                bytes_accessed=int(bytes_accessed)),
        )(logit0, tgt)

    # Per-block partials -> batch mean (division by the TRUE batch size).
    return jnp.sum(out[:, 0, 0]) / jnp.float32(B)


# ------------------------------------------------------------------ reference
def _reference(idx, logit0, target, hyperW, hyperS, apply, soft, sym):
    """Pure-JAX reference mirroring the PyTorch forward."""
    if apply:
        w = _SOFTPLUS_UNITY_ * jax.nn.softplus(hyperW[idx])
        hs = hyperS[idx]
        if soft:
            lp = jax.nn.log_softmax(logit0, axis=1)
            ls = jax.nn.log_softmax(hs, axis=1)
            ps = jax.nn.softmax(hs, axis=1)
            pl_ = jax.nn.softmax(logit0, axis=1)
            kl1 = ps * (ls - lp)
            if sym:
                kl2 = pl_ * (lp - ls)
                cls = 0.5 * jnp.sum(kl1 + kl2, axis=1)
            else:
                cls = jnp.sum(kl1, axis=1)
        else:
            h = jnp.argmax(hs, axis=1)
            lp = jax.nn.log_softmax(logit0, axis=1)
            cls = -jnp.take_along_axis(lp, h[:, None], axis=1)[:, 0]
        return jnp.mean(w * cls)
    else:
        lp = jax.nn.log_softmax(logit0, axis=1)
        cls = -jnp.take_along_axis(lp, target[:, None], axis=1)[:, 0]
        return jnp.mean(cls)


if __name__ == "__main__":
    # Module hyper-parameters (synthetic, small).
    N, C, B = 64, 32, 16
    key = jax.random.PRNGKey(0)
    k1, k2, k3, k4 = jax.random.split(key, 4)

    # __init__ parameter construction (deterministic).
    init_targets = jax.random.randint(k1, (N,), 0, C)
    eps = 0.05
    diff = math.log(1.0 - C + C / eps)
    hyperW = jnp.zeros((N,), jnp.float32)                                   # initWeights
    hyperS = (diff * (jax.nn.one_hot(init_targets, C) - 0.5)).astype(jnp.float32)

    # forward(idx, logit, target) inputs; logit is indexed as logit[0].
    idx = jax.random.randint(k2, (B,), 0, N)
    logit = jax.random.normal(k3, (1, B, C), jnp.float32)                   # logit[0] -> [B, C]
    target = jax.random.randint(k4, (B,), 0, C)

    configs = [
        dict(apply=True, soft=True, sym=True),    # model='BOTH'/'SOFT', sym=True
        dict(apply=True, soft=True, sym=False),   # model='SOFT', sym=False
        dict(apply=True, soft=False, sym=False),  # model='NONE'/'WGHT'
        dict(apply=False, soft=False, sym=False), # apply=False
    ]
    for cfg in configs:
        got = loss_model_forward(idx, logit[0], target, hyperW, hyperS, **cfg)
        got = jax.block_until_ready(got)
        want = _reference(idx, logit[0], target, hyperW, hyperS,
                          cfg["apply"], cfg["soft"], cfg["sym"])
        assert jnp.allclose(got, want, rtol=1e-5, atol=1e-5), (cfg, got, want)

    print("KERNEL_OK")
</pallas_src>

<mosaic_0001>
module attributes {stable_mosaic.version = 11 : i64} {
  func.func @_soft_loss_kernel(%arg0: i32, %arg1: memref<16xi32, #tpu.memory_space<smem>>, %arg2: memref<8x32xf32, #tpu.memory_space<vmem>>, %arg3: memref<8x1xf32, #tpu.memory_space<vmem>>, %arg4: memref<64x32xf32, #tpu.memory_space<any>>, %arg5: memref<1x8x128xf32, #tpu.memory_space<vmem>>, %arg6: memref<8x32xf32, #tpu.memory_space<vmem>>, %arg7: memref<!tpu.dma_semaphore, #tpu.memory_space<semaphore_mem>>) attributes {dimension_semantics = [#tpu.dimension_semantics<parallel>], iteration_bounds = array<i64: 2>, scalar_prefetch = 1 : i64, scratch_operands = 2 : i64, tpu.core_type = #tpu.core_type<tc>, window_params = [{transform_indices = @transform_0, window_bounds = array<i64: 8, 32>}, {transform_indices = @transform_1, window_bounds = array<i64: 8, 1>}, {}, {transform_indices = @transform_3, window_bounds = array<i64: 1, 8, 128>}]} {
    %c8_i32 = arith.constant 8 : i32
    %0 = arith.muli %arg0, %c8_i32 : i32
    %c16_i32 = arith.constant 16 : i32
    %1 = arith.subi %c16_i32, %0 : i32
    %c8_i32_0 = arith.constant 8 : i32
    %2 = arith.minsi %1, %c8_i32_0 : i32
    %c0_i32 = arith.constant 0 : i32
    %3 = arith.subi %2, %c0_i32 : i32
    %c1_i32 = arith.constant 1 : i32
    %c1_i32_1 = arith.constant 1 : i32
    %4 = arith.subi %c1_i32, %c1_i32_1 : i32
    %5 = arith.addi %3, %4 : i32
    %c1_i32_2 = arith.constant 1 : i32
    %6 = arith.divsi %5, %c1_i32_2 : i32
    %c1_i32_3 = arith.constant 1 : i32
    %c0_i32_4 = arith.constant 0 : i32
    %c0_i32_5 = arith.constant 0 : i32
    %7 = arith.subi %6, %c0_i32_5 : i32
    %8 = arith.addi %c0_i32_5, %7 : i32
    %c1_i32_6 = arith.constant 1 : i32
    scf.for %arg8 = %c0_i32_5 to %8 step %c1_i32_6  : i32 {
      %82 = arith.muli %arg8, %c1_i32_3 : i32
      %83 = arith.addi %c0_i32_4, %82 : i32
      %84 = arith.addi %0, %83 : i32
      %85 = arith.index_cast %84 : i32 to index
      %86 = memref.load %arg1[%85] : memref<16xi32, #tpu.memory_space<smem>>
      %c0_i32_35 = arith.constant 0 : i32
      %87 = tpu.memref_slice %arg4[%86, %c0_i32_35] : memref<64x32xf32, #tpu.memory_space<any>> -> memref<1x32xf32, #tpu.memory_space<any>>
      %88 = tpu.memref_squeeze %87 : memref<1x32xf32, #tpu.memory_space<any>> -> memref<32xf32, #tpu.memory_space<any>>
      %c0_i32_36 = arith.constant 0 : i32
      %89 = tpu.memref_slice %arg6[%83, %c0_i32_36] : memref<8x32xf32, #tpu.memory_space<vmem>> -> memref<1x32xf32, #tpu.memory_space<vmem>>
      %90 = tpu.memref_squeeze %89 : memref<1x32xf32, #tpu.memory_space<vmem>> -> memref<32xf32, #tpu.memory_space<vmem>>
      tpu.enqueue_dma source(%88 : memref<32xf32, #tpu.memory_space<any>>) target(%90 : memref<32xf32, #tpu.memory_space<vmem>>) target_semaphore(%arg7 : memref<!tpu.dma_semaphore, #tpu.memory_space<semaphore_mem>>)
    }
    %c0 = arith.constant 0 : index
    %c0_7 = arith.constant 0 : index
    %9 = vector.load %arg2[%c0, %c0_7] : memref<8x32xf32, #tpu.memory_space<vmem>>, vector<8x32xf32>
    %c0_8 = arith.constant 0 : index
    %c0_9 = arith.constant 0 : index
    %10 = vector.load %arg3[%c0_8, %c0_9] : memref<8x1xf32, #tpu.memory_space<vmem>>, vector<8x1xf32>
    %cst = arith.constant 0.000000e+00 : f32
    %11 = vector.broadcast %cst : f32 to vector<8x1xf32>
    %12 = arith.maximumf %10, %11 : vector<8x1xf32>
    %13 = vector.broadcast %cst : f32 to vector<8x1xf32>
    %14 = arith.subf %10, %13 : vector<8x1xf32>
    %15 = arith.cmpf one, %14, %14 : vector<8x1xf32>
    %16 = vector.broadcast %cst : f32 to vector<8x1xf32>
    %17 = arith.addf %10, %16 : vector<8x1xf32>
    %18 = math.absf %14 : vector<8x1xf32>
    %cst_10 = arith.constant 0.000000e+00 : f32
    %19 = vector.broadcast %cst_10 : f32 to vector<8x1xf32>
    %20 = arith.subf %19, %18 : vector<8x1xf32>
    %21 = math.exp %20 : vector<8x1xf32>
    %22 = math.log1p %21 : vector<8x1xf32>
    %23 = arith.addf %12, %22 : vector<8x1xf32>
    %24 = arith.select %15, %17, %23 : vector<8x1xi1>, vector<8x1xf32>
    %cst_11 = arith.constant 1.442700e+00 : f32
    %25 = vector.broadcast %cst_11 : f32 to vector<8x1xf32>
    %26 = arith.mulf %25, %24 : vector<8x1xf32>
    %cst_12 = arith.constant dense<0xFF800000> : vector<8xf32>
    %27 = vector.multi_reduction <maximumf>, %9, %cst_12 [1] : vector<8x32xf32> to vector<8xf32>
    %28 = vector.shape_cast %27 : vector<8xf32> to vector<8x1xf32>
    %29 = vector.broadcast %28 : vector<8x1xf32> to vector<8x32xf32>
    %30 = arith.subf %9, %29 : vector<8x32xf32>
    %31 = math.exp %30 : vector<8x32xf32>
    %cst_13 = arith.constant dense<0.000000e+00> : vector<8xf32>
    %32 = vector.multi_reduction <add>, %31, %cst_13 [1] : vector<8x32xf32> to vector<8xf32>
    %33 = vector.shape_cast %32 : vector<8xf32> to vector<8x1xf32>
    %34 = math.log %33 : vector<8x1xf32>
    %35 = vector.broadcast %34 : vector<8x1xf32> to vector<8x32xf32>
    %36 = arith.subf %30, %35 : vector<8x32xf32>
    %37 = tpu.reciprocal %33 : vector<8x1xf32> -> vector<8x1xf32>
    %38 = vector.broadcast %37 : vector<8x1xf32> to vector<8x32xf32>
    %39 = arith.mulf %31, %38 : vector<8x32xf32>
    %c0_i32_14 = arith.constant 0 : i32
    %40 = arith.subi %2, %c0_i32_14 : i32
    %c1_i32_15 = arith.constant 1 : i32
    %c1_i32_16 = arith.constant 1 : i32
    %41 = arith.subi %c1_i32_15, %c1_i32_16 : i32
    %42 = arith.addi %40, %41 : i32
    %c1_i32_17 = arith.constant 1 : i32
    %43 = arith.divsi %42, %c1_i32_17 : i32
    %c1_i32_18 = arith.constant 1 : i32
    %c0_i32_19 = arith.constant 0 : i32
    %c0_i32_20 = arith.constant 0 : i32
    %44 = arith.subi %43, %c0_i32_20 : i32
    %45 = arith.addi %c0_i32_20, %44 : i32
    %c1_i32_21 = arith.constant 1 : i32
    scf.for %arg8 = %c0_i32_20 to %45 step %c1_i32_21  : i32 {
      %82 = arith.muli %arg8, %c1_i32_18 : i32
      %83 = arith.addi %c0_i32_19, %82 : i32
      %c0_i32_35 = arith.constant 0 : i32
      %c0_i32_36 = arith.constant 0 : i32
      %c0_i32_37 = arith.constant 0 : i32
      %84 = tpu.memref_slice %arg4[%c0_i32_35, %c0_i32_37] : memref<64x32xf32, #tpu.memory_space<any>> -> memref<1x32xf32, #tpu.memory_space<any>>
      %85 = tpu.memref_squeeze %84 : memref<1x32xf32, #tpu.memory_space<any>> -> memref<32xf32, #tpu.memory_space<any>>
      %c0_i32_38 = arith.constant 0 : i32
      %86 = tpu.memref_slice %arg6[%c0_i32_36, %c0_i32_38] : memref<8x32xf32, #tpu.memory_space<vmem>> -> memref<1x32xf32, #tpu.memory_space<vmem>>
      %87 = tpu.memref_squeeze %86 : memref<1x32xf32, #tpu.memory_space<vmem>> -> memref<32xf32, #tpu.memory_space<vmem>>
      tpu.wait_dma2 semaphore(%arg7 : memref<!tpu.dma_semaphore, #tpu.memory_space<semaphore_mem>>) src(%85 : memref<32xf32, #tpu.memory_space<any>>) dst(%87 : memref<32xf32, #tpu.memory_space<vmem>>)
    }
    %c0_22 = arith.constant 0 : index
    %c0_23 = arith.constant 0 : index
    %46 = vector.load %arg6[%c0_22, %c0_23] : memref<8x32xf32, #tpu.memory_space<vmem>>, vector<8x32xf32>
    %cst_24 = arith.constant dense<0xFF800000> : vector<8xf32>
    %47 = vector.multi_reduction <maximumf>, %46, %cst_24 [1] : vector<8x32xf32> to vector<8xf32>
    %48 = vector.shape_cast %47 : vector<8xf32> to vector<8x1xf32>
    %49 = vector.broadcast %48 : vector<8x1xf32> to vector<8x32xf32>
    %50 = arith.subf %46, %49 : vector<8x32xf32>
    %51 = math.exp %50 : vector<8x32xf32>
    %cst_25 = arith.constant dense<0.000000e+00> : vector<8xf32>
    %52 = vector.multi_reduction <add>, %51, %cst_25 [1] : vector<8x32xf32> to vector<8xf32>
    %53 = vector.shape_cast %52 : vector<8xf32> to vector<8x1xf32>
    %54 = math.log %53 : vector<8x1xf32>
    %55 = vector.broadcast %54 : vector<8x1xf32> to vector<8x32xf32>
    %56 = arith.subf %50, %55 : vector<8x32xf32>
    %57 = tpu.reciprocal %53 : vector<8x1xf32> -> vector<8x1xf32>
    %58 = vector.broadcast %57 : vector<8x1xf32> to vector<8x32xf32>
    %59 = arith.mulf %51, %58 : vector<8x32xf32>
    %60 = arith.subf %56, %36 : vector<8x32xf32>
    %61 = arith.subf %59, %39 : vector<8x32xf32>
    %62 = arith.mulf %61, %60 : vector<8x32xf32>
    %cst_26 = arith.constant dense<0.000000e+00> : vector<8xf32>
    %63 = vector.multi_reduction <add>, %62, %cst_26 [1] : vector<8x32xf32> to vector<8xf32>
    %64 = vector.shape_cast %63 : vector<8xf32> to vector<8x1xf32>
    %cst_27 = arith.constant 5.000000e-01 : f32
    %65 = vector.broadcast %cst_27 : f32 to vector<8x1xf32>
    %66 = arith.mulf %65, %64 : vector<8x1xf32>
    %67 = tpu.iota {dimensions = array<i32: 0>} : vector<8x1xi32>
    %c8_i32_28 = arith.constant 8 : i32
    %68 = arith.muli %arg0, %c8_i32_28 : i32
    %69 = vector.broadcast %68 : i32 to vector<8x1xi32>
    %70 = arith.addi %67, %69 : vector<8x1xi32>
    %c16_i32_29 = arith.constant 16 : i32
    %71 = vector.broadcast %c16_i32_29 : i32 to vector<8x1xi32>
    %72 = arith.cmpi slt, %70, %71 : vector<8x1xi32>
    %73 = arith.mulf %26, %66 : vector<8x1xf32>
    %cst_30 = arith.constant 0.000000e+00 : f32
    %74 = vector.broadcast %cst_30 : f32 to vector<8x1xf32>
    %75 = arith.select %72, %73, %74 : vector<8x1xi1>, vector<8x1xf32>
    %76 = vector.shape_cast %75 : vector<8x1xf32> to vector<1x8x1xf32>
    %cst_31 = arith.constant dense<0.000000e+00> : vector<1xf32>
    %77 = vector.multi_reduction <add>, %76, %cst_31 [1, 2] : vector<1x8x1xf32> to vector<1xf32>
    %78 = vector.shape_cast %77 : vector<1xf32> to vector<1x1x1xf32>
    %79 = vector.extract %78[0, 0, 0] : f32 from vector<1x1x1xf32>
    %80 = vector.broadcast %79 : f32 to vector<1x8x128xf32>
    %c0_32 = arith.constant 0 : index
    %c0_33 = arith.constant 0 : index
    %c0_34 = arith.constant 0 : index
    %81 = vector.load %arg5[%c0_32, %c0_33, %c0_34] : memref<1x8x128xf32, #tpu.memory_space<vmem>>, vector<1x8x128xf32>
    tpu.vector_store %arg5[%c0_32, %c0_33, %c0_34], %80 {strides = array<i32>} : memref<1x8x128xf32, #tpu.memory_space<vmem>>, vector<1x8x128xf32>,
    return
  }
  func.func @transform_0(%arg0: i32, %arg1: memref<16xi32, #tpu.memory_space<smem>>) -> (i32, i32) {
    %c0_i32 = arith.constant 0 : i32
    %c0_i32_0 = arith.constant 0 : i32
    return %arg0, %c0_i32 : i32, i32
  }
  func.func @transform_1(%arg0: i32, %arg1: memref<16xi32, #tpu.memory_space<smem>>) -> (i32, i32) {
    %c0_i32 = arith.constant 0 : i32
    %c0_i32_0 = arith.constant 0 : i32
    return %arg0, %c0_i32 : i32, i32
  }
  func.func @transform_3(%arg0: i32, %arg1: memref<16xi32, #tpu.memory_space<smem>>) -> (i32, i32, i32) {
    %c0_i32 = arith.constant 0 : i32
    %c0_i32_0 = arith.constant 0 : i32
    %c0_i32_1 = arith.constant 0 : i32
    return %arg0, %c0_i32, %c0_i32_0 : i32, i32, i32
  }
}

</mosaic_0001>

<bundles_post_ra>
// kernel: tpu_custom_call.1
= control target key start
LH: loop header
LB: loop body
LE: loop exit
PB: predicated region body
PF: predicated region fallthrough
CT: control target
= control target key end

     0   :  { %s787_s0 = inlined_call_operand.vmem [shape: s32[16], index: 0, kind: input, shape index: {}]   ;;  %s788_s1 = inlined_call_operand.vmem [shape: f32[16,32], index: 1, kind: input, shape index: {}]   ;;  %s789_s2 = inlined_call_operand.vmem [shape: f32[16,1], index: 2, kind: input, shape index: {}]   ;;  %s790_s3 = inlined_call_operand.vmem [shape: f32[64,32], index: 3, kind: input, shape index: {}]   ;;  %s791_s4 = inlined_call_operand.hbm [shape: f32[2,8,128], index: 4, kind: output, shape index: {}]  }
   0x1   :  { %s9_s17 = sshll.u32 %s787_s0, 4  ;;  %s10_s17 = int_to_ptr.vmem [resolvable:$true] %s9_s17 }
   0x2   :  { %s516_s18 = scalar_lea.vmem %s10_s17, 16  ;;  %p521_p1 = scmp.lt.s32.totalorder %s10_s17, %s10_s17 }
   0x3   :  { %p517_p0 = scmp.ne.s32.totalorder %s10_s17, %s516_s18  ;;  %p522_p2 = scmp.lt.s32.totalorder %s516_s18, %s516_s18 }
   0x5   :  { %p523_p3 = por %p522_p2, %p521_p1 }
   0x7   :  { %p524_p4 = pnand %p523_p3, %p517_p0 }
   0x9   :  { %527 = shalt.err (!%p524_p4)  }
   0xa   :  { %s612_s19 = smov [#allocation5]  }
   0xb   :  { %12 = dma.vmem_to_smem %s10_s17, 16, %s612_s19, [#allocation4] }
   0xc   :  { %580 = dma.done.wait [#allocation4], 16 }
   0xd   :  { %581 = vsyncadd [#allocation4], 4294967280 }
   0xe   :  { %14 = sfence }
   0xf   :  { %15 = vsyncpa [#allocation7], 0 }
  0x10   :  { %17 = vsyncpa [#allocation7 + $0x1], 0  ;;  %s642_s20 = smov 0   ;;  %s644_s21 = smov 0  }
  0x11   :  { %s646_s0 = smov 0   ;;  %s648_s22 = smov 0  }
  0x12 LB: > { %s663_s23 = sadd.s32 4294967295, %s602_s22   ;;  %s421_s24 = sadd.s32 4294967294, %s602_s22   ;;  %s602_s22 = sphi %s648_s22, %s797_s22   ;;  %s598_s0 = sphi %s646_s0, %s796_s0   ;;  %s594_s21 = sphi %s644_s21, %s795_s21   ;;  %s590_s20 = sphi %s642_s20, %s794_s20  }
  0x13   : > { %s667_s25 = sadd.s32 1, %s602_s22   ;;  %s82_s26 = sadd.s32 1, %s598_s0 }
  0x14   : > { %s79_s27 = ssub.s32 %s602_s22, %s667_s25  ;;  %p92_p5 = scmp.ne.s32.totalorder %s598_s0, %s594_s21 }
  0x15   : > { %p80_p6 = scmp.eq.s32.totalorder %s79_s27, 0  ;;  %p93_p7 = scmp.eq.s32.totalorder %s663_s23, 1 }
  0x16   : > { %p98_p8 = scmp.ne.s32.totalorder %s594_s21, %s590_s20  ;;  %p99_p9 = scmp.eq.s32.totalorder %s421_s24, 1 }
  0x17   : > { %s678_s28 = scalar_select %p80_p6, %s598_s0, %s82_s26  }
  0x18   : > { %p680_p10 = por %p93_p7, %p92_p5  ;;  %p684_p11 = por %p99_p9, %p98_p8 }
  0x19   : > { %p424_p12 = scmp.ge.s32.totalorder %s602_s22, 1  ;;  %p131_p13 = scmp.lt.s32.totalorder %s602_s22, 3 }
  0x1b   : > { %p132_p0 = pnand %p424_p12, %p131_p13 }
  0x1c   : > { %s153_s5 = sand.u32 (!%p132_p0), 1, %s594_s21   ;;  %p156_p1 = scmp.lt.s32.totalorder (!%p132_p0), %s663_s23, 1 }
  0x1d   : > { %135 = sbr.rel (%p132_p0) target bundleno = 1082 (0x43a), region = 28  ;;  %s694_s6 = sshll.u32 (!%p132_p0), %s153_s5, 3 }
  0x1e   : > { %s697_s7 = sshll.u32 (!%p132_p0), %s663_s23, 3  ;;  %s155_s18 = scalar_lea.vmem (!%p132_p0), [#allocation6], %s694_s6 }
  0x1f   : > { %s700_s8 = ssub.s32 (!%p132_p0), 16, %s697_s7 }
  0x20   : > { %p166_p2 = scmp.lt.s32.totalorder (!%p132_p0), %s700_s8, 8  ;;  %p436_p3 = scmp.le.s32.totalorder (!%p132_p0), %s700_s8, 0 }
  0x24   : > { %s157_s9 = scalar_select %p156_p1, %s663_s23, 1 }
  0x25   : > { %s711_s17 = scalar_select %p166_p2, %s700_s8, 8 }
  0x26   : > { %s426_s10 = sshll.u32 %s157_s9, 3  ;;  %386 = sbr.rel (%p436_p3) target bundleno = 65 (0x41), region = 116 }
  0x27   : > { %s159_s13 = scalar_lea.vmem %s788_s1, %s426_s10  ;;  %s163_s16 = scalar_lea.vmem %s789_s2, %s426_s10 }
  0x28   : > { %s604_s19 = smov (!%p436_p3), 0  }
  0x2d LB: >> { %s174_s24 = sadd.s32 %s606_s19, %s697_s7  ;;  %s177_s10 = scalar_lea.vmem [#allocation2], %s606_s19  ;;  %s606_s19 = sphi %s604_s19, %s171_s19  }
  0x2e   : >> { %s175_s26 = sld [smem:[#allocation5 + %s174_s24]] }
  0x34   : >> { %s176_s11 = scalar_lea.vmem %s790_s3, %s175_s26 }
  0x35   : >> { %v195_v0 = vld [vmem:[%s176_s11] sm:$0x1] }
  0x36   : >> { %196 = vst [vmem:[%s177_s10] sm:$0x1] %v195_v0 }
  0x37   : >> { %221 = vsyncadd [#allocation3], 16  ;;  %s171_s19 = sadd.s32 1, %s606_s19  }
  0x38   : >> { %p170_p4 = scmp.ge.s32.totalorder %s171_s19, %s711_s17 }
  0x3a   : > { %173 = sbr.rel (!%p170_p4) target bundleno = 45 (0x2d), region = 122 }
  0x41 PF: > { %v222_v1 = vld [vmem:[%s159_s13] sm:$0xff]  ;;  %vm243_vm0 = vcmask 261120   ;;  %s608_s12 = smov (!%p436_p3), 0  }
  0x42   : > { %v244_v2 = vsel %vm243_vm0, %v222_v1, -inf  ;;  %v223_v6 = vld [vmem:[%s163_s16] sm:$0xff] }
  0x43   : > { %245 = vmax.xlane.f32.xlu0 %v244_v2  ;;  %v227_v7 = vand.u32 2147483647, %v223_v6  ;;  %v224_v20 = vmax.f32 %v223_v6, 0.0  ;;  %vm225_vm2 = vcmp.ne.f32.partialorder %v223_v6, %v223_v6 }
  0x45   : > { %v228_v8 = vsub.f32 0.0, %v227_v7 }
  0x47   : > { %v229_v9 = vmul.f32 1.442695, %v228_v8 }
  0xd0   : > { %v246_v3 = vpop.xlane.xlu0 %245 }
  0xd1   : > { %v723_v4 = vsub.f32 %v222_v1, %v246_v3 }
  0xd3   : > { %v248_v5 = vmul.f32 1.442695, %v723_v4 }
  0xd5   : > { %500 = vpow2.f32 %v248_v5 }
  0xd6   : > { %502 = vpow2.f32 %v229_v9 }
  0xdf   : > { %v501_v10 = vpop.eup %500 }
  0xe0   : > { %v250_v11 = vsel %vm243_vm0, %v501_v10, 0.0  ;;  %v503_v12 = vpop.eup %502 }
  0xe1   : > { %251 = vadd.xlane.f32.xlu0 %v250_v11  ;;  %v231_v13 = vadd.f32 1.0, %v503_v12  ;;  %v234_v14 = vmul.f32 -0.5, %v503_v12  ;;  %v237_v17 = vand.u32 2147483647, %v503_v12 }
  0xe3   : > { %504 = vlog2.f32 %v231_v13  ;;  %v235_v15 = vadd.f32 1.0, %v234_v14  ;;  %vm238_vm1 = vcmp.lt.f32.partialorder %v237_v17, 0.0004427343 }
  0xe5   : > { %v236_v19 = vmul.f32 %v503_v12, %v235_v15 }
  0xed   : > { %v505_v16 = vpop.eup %504 }
  0xee   : > { %v233_v18 = vmul.f32 0.6931472, %v505_v16 }
  0xf0   : > { %v239_v21 = vsel %vm238_vm1, %v236_v19, %v233_v18 }
  0xf1   : > { %v240_v22 = vadd.f32 %v239_v21, %v224_v20 }
  0xf3   : > { %v241_v23 = vsel %vm225_vm2, %v223_v6, %v240_v22 }
  0xf4   : > { %v242_v24 = vmul.f32 1.4427, %v241_v23 }
 0x16e   : > { %v252_v25 = vpop.xlane.xlu0 %251 }
 0x16f   : > { %506 = vlog2.f32 %v252_v25 }
 0x170   : > { %508 = vrcp.f32 %v252_v25 }
 0x176   : > { %391 = sbr.rel (%p436_p3) target bundleno = 392 (0x188), region = 127 }
 0x179   : > { %v507_v26 = vpop.eup %506 }
 0x17a   : > { %v509_v27 = vpop.eup %508  ;;  %v254_v28 = vmul.f32 0.6931472, %v507_v26 }
 0x17b   : > { %v257_v29 = vmul.f32 %v509_v27, %v501_v10 }
 0x17c   : > { %v255_v30 = vsub.f32 %v723_v4, %v254_v28 }
 0x17d LB: >> { %582 = dma.done.wait [#allocation3], 16  ;;  %s610_s12 = sphi %s608_s12, %s261_s12  }
 0x17e   : >> { %583 = vsyncadd [#allocation3], 4294967280  ;;  %s261_s12 = sadd.s32 1, %s610_s12  }
 0x17f   : >> { %p260_p5 = scmp.ge.s32.totalorder %s261_s12, %s711_s17 }
 0x181   : > { %263 = sbr.rel (!%p260_p5) target bundleno = 381 (0x17d), region = 133 }
 0x188 PF: > { %v288_v48 = vlaneseq  ;;  %v290_v50 = vstv %s697_s7  ;;  %vm295_vm4 = vcmask 7168   ;;  %s432_s7 = sshll.u32 %s663_s23, 7  ;;  %s322_s8 = sshll.u32 %s155_s18, 4  ;;  %s743_s8 = int_to_ptr.vmem [resolvable:$true] %s322_s8 }
 0x189   : > { %v266_v31 = vld [vmem:[#allocation2] sm:$0xff]  ;;  %s741_s15 = scalar_lea.hbm %s791_s4, %s432_s7  ;;  %s309_s17 = scalar_lea.sflag [#allocation7], %s153_s5 }
 0x18a   : > { %v267_v32 = vsel %vm243_vm0, %v266_v31, -inf  ;;  %v289_v49 = vshrl.u32 %v288_v48, 7  ;;  %s528_s19 = scalar_lea.vmem %s743_s8, 128  ;;  %s613_s23 = smov [#allocation6]  }
 0x18b   : > { %268 = vmax.xlane.f32.xlu0 %v267_v32  ;;  %p529_p6 = scmp.ne.s32.totalorder %s743_s8, %s528_s19  ;;  %s532_s24 = sshll.u32 %s613_s23, 4  ;;  %s533_s24 = int_to_ptr.vmem [resolvable:$false] %s532_s24 }
 0x18c   : > { %v291_v51 = vadd.s32 %v290_v50, %v289_v49  ;;  %s534_s26 = scalar_lea.vmem %s533_s24, 256  ;;  %p535_p9 = scmp.lt.s32.totalorder %s743_s8, %s533_s24 }
 0x18d   : > { %p530_p7 = pnand %p529_p6, %p680_p10  ;;  %p536_p12 = scmp.lt.s32.totalorder %s534_s26, %s528_s19 }
 0x18e   : > { %vm292_vm3 = vcmp.lt.s32.totalorder %v291_v51, 16 }
 0x18f   : > { %p531_p8 = pneg %p530_p7  ;;  %p537_p13 = por %p536_p12, %p535_p9 }
 0x191   : > { %p538_p0 = pnand %p537_p13, %p531_p8 }
 0x218   : > { %v269_v33 = vpop.xlane.xlu0 %268 }
 0x219   : > { %v270_v34 = vsub.f32 %v266_v31, %v269_v33 }
 0x21b   : > { %v271_v35 = vmul.f32 1.442695, %v270_v34 }
 0x21d   : > { %510 = vpow2.f32 %v271_v35 }
 0x227   : > { %v511_v36 = vpop.eup %510 }
 0x228   : > { %v273_v37 = vsel %vm243_vm0, %v511_v36, 0.0 }
 0x229   : > { %274 = vadd.xlane.f32.xlu0 %v273_v37 }
 0x2b6   : > { %v275_v38 = vpop.xlane.xlu0 %274 }
 0x2b7   : > { %512 = vlog2.f32 %v275_v38 }
 0x2b8   : > { %514 = vrcp.f32 %v275_v38 }
 0x2c1   : > { %v513_v39 = vpop.eup %512 }
 0x2c2   : > { %v515_v40 = vpop.eup %514  ;;  %v277_v41 = vmul.f32 0.6931472, %v513_v39 }
 0x2c3   : > { %v280_v42 = vmul.f32 %v515_v40, %v511_v36 }
 0x2c4   : > { %v278_v43 = vsub.f32 %v270_v34, %v277_v41 }
 0x2c5   : > { %v282_v45 = vsub.f32 %v280_v42, %v257_v29 }
 0x2c6   : > { %v281_v44 = vsub.f32 %v278_v43, %v255_v30 }
 0x2c8   : > { %v283_v46 = vmul.f32 %v282_v45, %v281_v44 }
 0x2ca   : > { %v284_v47 = vsel %vm243_vm0, %v283_v46, 0.0 }
 0x2cb   : > { %285 = vadd.xlane.f32.xlu1 %v284_v47 }
 0x358   : > { %v286_v52 = vpop.xlane.xlu1 %285 }
 0x359   : > { %v287_v53 = vmul.f32 0.5, %v286_v52 }
 0x35b   : > { %v293_v54 = vmul.f32 %v287_v53, %v242_v24 }
 0x35d   : > { %v294_v55 = vsel %vm292_vm3, %v293_v54, 0.0 }
 0x35e   : > { %v296_v56 = vsel %vm295_vm4, %v294_v55, 0.0 }
 0x35f   : > { %297 = vadd.xlane.f32.xlu1 %v296_v56 }
 0x3ec   : > { %v298_v57 = vpop.xlane.xlu1 %297 }
 0x3ed   : > { %v299_v58 = vrot.slane %v298_v57, 4 }
 0x3ef   : > { %v300_v59 = vadd.f32 %v299_v58, %v298_v57 }
 0x3f1   : > { %v301_v60 = vrot.slane %v300_v59, 2 }
 0x3f3   : > { %v302_v61 = vadd.f32 %v301_v60, %v300_v59 }
 0x3f5   : > { %v303_v62 = vrot.slane %v302_v61, 1 }
 0x3f7   : > { %v304_v63 = vadd.f32 %v303_v62, %v302_v61 }
 0x3f9   : > { %442 = vpush %v304_v63 }
 0x42a   : > { %s443_s16 = spop %442 }
 0x42b   : > { %v306_v0 = vstv %s443_s16 }
 0x42c   : > { %307 = vst [vmem:[%s155_s18] sm:$0xff] %v306_v0 }
 0x42d   : > { %541 = shalt.err (!%p538_p0)
}
 0x42e   : > { %s542_s5 = scalar_lea.hbm %s741_s15, 128  ;;  %s546_s27 = scalar_lea.hbm %s791_s4, 256 }
 0x42f   : > { %p543_p1 = scmp.ne.s32.totalorder %s741_s15, %s542_s5  ;;  %p547_p4 = scmp.lt.u32.totalorder %s741_s15, %s791_s4 }
 0x430   : > { %p548_p5 = scmp.lt.u32.totalorder %s546_s27, %s542_s5  ;;  %p550_p7 = scmp.lt.u32.totalorder %s542_s5, %s741_s15 }
 0x431   : > { %p544_p2 = pnand %p543_p1, %p680_p10 }
 0x432   : > { %p549_p6 = por %p548_p5, %p547_p4 }
 0x433   : > { %p545_p3 = pneg %p544_p2 }
 0x434   : > { %p551_p8 = por %p550_p7, %p549_p6 }
 0x436   : > { %p552_p9 = pnand %p551_p8, %p545_p3 }
 0x438   : > { %555 = shalt.err (!%p552_p9)
}
 0x439   : > { %444 = dma.vmem_to_hbm [thread:$0]  (%p680_p10), %s743_s8, 128, %s741_s15, %s309_s17  }
 0x43a PF: > { %p450_p12 = scmp.ge.s32.totalorder %s602_s22, 2  ;;  %s334_s10 = sand.u32 1, %s590_s20  }
 0x43b   : > { %s335_s12 = scalar_lea.sflag [#allocation7], %s334_s10 }
 0x43c   : > { %p447_p13 = pnand %p450_p12, %p684_p11 }
 0x43e   : > { %585 = dma.done.wait (!%p447_p13), %s335_s12, 128  }
 0x43f   : > { %587 = vsyncadd (!%p447_p13), %s335_s12, 4294967168  ;;  %p20_p0 = scmp.ge.s32.totalorder %s667_s25, 4   ;;  %s794_s20 = smov %s594_s21 }
 0x440   : > { %s795_s21 = smov %s598_s0  ;;  %s796_s0 = smov %s678_s28 }
 0x441   : > { %s797_s22 = smov %s667_s25  ;;  %22 = sbr.rel (!%p20_p0) target bundleno = 18 (0x12), region = 144 }
 0x448   :  { %340 = vsyncpa [#allocation7], 1 }
 0x449   :  { %342 = vsyncpa [#allocation7 + $0x1], 1 }
 0x44a   :  { %343 = vsyncmov [#allocation3] }
 0x44d   :  { %s344_s22 = vpop.sfrf %343 }
 0x44e   :  { %p435_p10 = scmp.ne.s32.totalorder %s344_s22, 0 }
 0x450   :  { %348 = shalt.err (%p435_p10)  }

</bundles_post_ra>
